<compile_context>
chip_gen: v5e
topology: v5e:2x2
jax: 0.10.0
libtpu: 0.0.40
codegen_flags: <defaults>
</compile_context>

<pallas_src>
import math

import jax
import jax.numpy as jnp
from jax.experimental import pallas as pl
from jax.experimental.pallas import tpu as pltpu

# ----------------------------- config ---------------------------------------
DIM = 64
N_HEADS = 4
HEAD_DIM = DIM // N_HEADS
HD2 = HEAD_DIM // 2
NORM_EPS = 1e-5
MULTIPLE_OF = 64
FFN_DIM_MULTIPLIER = 0.1
BATCH = 2
SEQ = 8
START_POS = 0
NEG_INF = -1e30
BS = BATCH * SEQ                     # flattened rows handled per tile


def _ffn_hidden_dim() -> int:
    hidden = 4 * DIM
    hidden = int(2 * hidden / 3)
    hidden = int(FFN_DIM_MULTIPLIER * hidden)
    hidden = MULTIPLE_OF * ((hidden + MULTIPLE_OF - 1) // MULTIPLE_OF)
    return hidden


HIDDEN = _ffn_hidden_dim()
assert HIDDEN == DIM, "literal reference FFN requires hidden_dim == dim"
# One (64,64) 0/1 mask is reused for KB, VB and the denominator matmul; that
# reuse relies on BS == HEAD_DIM (16 == 16) for this config.
assert BS == HEAD_DIM
assert N_HEADS * BS == DIM


# ----------------------------- kernel ---------------------------------------
def encoder_block_kernel(
    x_ref,      # (TM, D)        flattened (batch*seq, dim) input, f32
    cos_ref,    # (TM, 2*D)      cos tiled over heads, duplicated for q|k lanes
    sin_ref,    # (TM, 2*D)      sin tiled over heads (all-positive)
    bias_ref,   # (TM, NH*TM)    batch block-diag 0 / -1e30, tiled per head
    mask_ref,   # (D, NH*TM)     0/1 head block-diagonal mask (reused 3x)
    wqkv_ref,   # (D, 5*D) bf16  [WqT*s | WkT | WqT_rotswap*s | WkT_rotswap | WvT]
    wo_ref,     # (D, D)   bf16
    anw_ref,    # (1, D)         attention_norm weight
    fnw_ref,    # (1, D)         ffn_norm weight
    w12_ref,    # (D, 2*HIDDEN) bf16  [w1T | w2T]
    w3_ref,     # (HIDDEN, D)   bf16
    o_ref,      # (TM, D)
):
    x = x_ref[...]
    mask = mask_ref[...]

    def rmsnorm(t, w):
        ms = jnp.mean(t * t, axis=-1, keepdims=True)
        return w * (t * jax.lax.rsqrt(ms + NORM_EPS))

    # ---- attention branch ----
    xn = rmsnorm(x, anw_ref[...])

    # single fused projection: q*scale | k | q_rotswap*scale | k_rotswap | v
    proj = jnp.dot(xn.astype(jnp.bfloat16), wqkv_ref[...],
                   preferred_element_type=jnp.float32)          # (TM, 5D) f32
    qk = proj[:, 0:2 * DIM]            # q (lanes 0:64) | k (lanes 64:128)
    qks = proj[:, 2 * DIM:4 * DIM]     # sign-swapped halves for RoPE
    v = proj[:, 4 * DIM:5 * DIM]       # (TM, 64)

    # full-width rotary embedding (rotate-half folded into the extra weights)
    qk_rot = qk * cos_ref[...] + qks * sin_ref[...]
    q = qk_rot[:, :DIM]                # already includes 1/sqrt(head_dim)
    k = qk_rot[:, DIM:]

    # block-diagonal all-heads attention (no per-head loop, no lane slicing)
    kt = k.T                                                       # (D, TM)
    kb = jnp.concatenate([kt] * N_HEADS, axis=1) * mask            # (D, NH*TM)
    s = jnp.dot(q, kb, preferred_element_type=jnp.float32) + bias_ref[...]

    m = jnp.max(s, axis=-1, keepdims=True)       # shared row-max (shift-invariant)
    p = jnp.exp(s - m)                           # cross-batch entries underflow to 0
    denom = jnp.dot(p, mask, preferred_element_type=jnp.float32)  # per-head sums
    p = p * pl.reciprocal(denom, approx=True)

    vb = jnp.concatenate([v] * N_HEADS, axis=0) * mask             # (NH*TM, D)
    attn = jnp.dot(p, vb, preferred_element_type=jnp.float32)      # (TM, D)

    h = x + jnp.dot(attn.astype(jnp.bfloat16), wo_ref[...],
                    preferred_element_type=jnp.float32)

    # ---- feed-forward branch (literal reference: w3(silu(w1(x)) * w2(x))) ----
    hn = rmsnorm(h, fnw_ref[...])
    h12 = jnp.dot(hn.astype(jnp.bfloat16), w12_ref[...],
                  preferred_element_type=jnp.float32)              # (TM, 2*HIDDEN)
    w1o = h12[:, :HIDDEN]
    x_v = h12[:, HIDDEN:]
    gate = (w1o * jax.nn.sigmoid(w1o)) * x_v
    ff = jnp.dot(gate.astype(jnp.bfloat16), w3_ref[...],
                 preferred_element_type=jnp.float32)

    o_ref[...] = h + ff


# ----------------------------- wrapper ---------------------------------------
def encoder_block(x_flat, cos2, sin2, bias64, mask, wqkvT, woT, anw, fnw, w12T, w3T):
    bs, d = x_flat.shape
    # Row tile: whole flattened batch per tile here. For larger workloads TM
    # can shrink, but must stay a multiple of SEQ so every tile holds complete
    # batches (attention keys come from the same tile).
    TM = bs
    assert TM % SEQ == 0 and bs % TM == 0
    grid = (bs // TM,)

    rows = lambda i: (i, 0)     # activation tiles follow the row grid
    whole = lambda i: (0, 0)    # weights / constants stay VMEM-resident

    nkv = N_HEADS * TM
    flops = (2 * bs * d * wqkvT.shape[1]      # fused qkv projection
             + 2 * bs * d * nkv               # scores
             + 2 * bs * nkv * nkv             # denominator matmul
             + 2 * bs * nkv * d               # PV
             + 2 * bs * d * d                 # wo
             + 2 * bs * d * w12T.shape[1]     # w1|w2
             + 2 * bs * HIDDEN * d)           # w3
    transcendentals = 2 * bs * nkv + bs * HIDDEN + 2 * bs
    bytes_accessed = int(sum(a.size * a.dtype.itemsize for a in
                             (x_flat, cos2, sin2, bias64, mask, wqkvT, woT,
                              anw, fnw, w12T, w3T)) + bs * d * 4)

    return pl.pallas_call(
        encoder_block_kernel,
        out_shape=jax.ShapeDtypeStruct((bs, d), jnp.float32),
        grid=grid,
        in_specs=[
            pl.BlockSpec((TM, d), rows),                   # x
            pl.BlockSpec((TM, 2 * d), rows),               # cos
            pl.BlockSpec((TM, 2 * d), rows),               # sin
            pl.BlockSpec((TM, nkv), whole),                # bias64
            pl.BlockSpec((d, nkv), whole),                 # head mask
            pl.BlockSpec((d, 5 * d), whole),               # wqkvT
            pl.BlockSpec((d, d), whole),                   # woT
            pl.BlockSpec((1, d), whole),                   # attention_norm w
            pl.BlockSpec((1, d), whole),                   # ffn_norm w
            pl.BlockSpec((d, 2 * HIDDEN), whole),          # w1|w2
            pl.BlockSpec((HIDDEN, d), whole),              # w3
        ],
        out_specs=pl.BlockSpec((TM, d), rows),
        compiler_params=pltpu.CompilerParams(
            dimension_semantics=("parallel",)),
        cost_estimate=pl.CostEstimate(flops=int(flops),
                                      transcendentals=int(transcendentals),
                                      bytes_accessed=bytes_accessed),
    )(x_flat, cos2, sin2, bias64, mask, wqkvT, woT, anw, fnw, w12T, w3T)


# -------------------------- pure-JAX reference --------------------------------
def ref_forward(x, cos, sin, wq, wk, wv, wo, anw, fnw, w1, w2, w3):
    hp = jax.lax.Precision.HIGHEST

    def rms(t, w):
        return w * (t * jax.lax.rsqrt(jnp.mean(t * t, -1, keepdims=True) + NORM_EPS))

    def rope(t):  # interleaved complex pairs, as in torch view_as_complex
        B, S, H, hd = t.shape
        tp = t.reshape(B, S, H, hd // 2, 2)
        te, to = tp[..., 0], tp[..., 1]
        c = cos[None, :, None, :]
        s = sin[None, :, None, :]
        return jnp.stack([te * c - to * s, te * s + to * c], -1).reshape(B, S, H, hd)

    B, S, D = x.shape
    xn = rms(x, anw)
    q = jnp.dot(xn, wq.T, precision=hp).reshape(B, S, N_HEADS, HEAD_DIM)
    k = jnp.dot(xn, wk.T, precision=hp).reshape(B, S, N_HEADS, HEAD_DIM)
    v = jnp.dot(xn, wv.T, precision=hp).reshape(B, S, N_HEADS, HEAD_DIM)
    q, k = rope(q), rope(k)
    q, k, v = (t.transpose(0, 2, 1, 3) for t in (q, k, v))
    scores = jnp.einsum("bhqd,bhkd->bhqk", q, k, precision=hp) / math.sqrt(HEAD_DIM)
    scores = jax.nn.softmax(scores, axis=-1)
    o = jnp.einsum("bhqk,bhkd->bhqd", scores, v, precision=hp)
    o = o.transpose(0, 2, 1, 3).reshape(B, S, D)
    h = x + jnp.dot(o, wo.T, precision=hp)
    hn = rms(h, fnw)
    sw = jax.nn.silu(jnp.dot(hn, w1.T, precision=hp))
    xv = jnp.dot(hn, w2.T, precision=hp)
    ff = jnp.dot(sw * xv, w3.T, precision=hp)
    return h + ff


# ------------------------------- main -----------------------------------------
if __name__ == "__main__":
    key = jax.random.PRNGKey(0)
    ks = jax.random.split(key, 10)

    def lin(k, out_f, in_f):  # nn.Linear(in_f, out_f, bias=False) weight: (out_f, in_f)
        return jax.random.normal(k, (out_f, in_f), jnp.float32) * 0.05

    wq = lin(ks[0], N_HEADS * HEAD_DIM, DIM)
    wk = lin(ks[1], N_HEADS * HEAD_DIM, DIM)
    wv = lin(ks[2], N_HEADS * HEAD_DIM, DIM)
    wo = lin(ks[3], DIM, N_HEADS * HEAD_DIM)
    w1 = lin(ks[4], HIDDEN, DIM)
    w2 = lin(ks[5], DIM, HIDDEN)
    w3 = lin(ks[6], HIDDEN, DIM)
    attn_nw = jnp.ones((DIM,), jnp.float32) + 0.01 * jax.random.normal(ks[7], (DIM,), jnp.float32)
    ffn_nw = jnp.ones((DIM,), jnp.float32) + 0.01 * jax.random.normal(ks[8], (DIM,), jnp.float32)
    x = jax.random.normal(ks[9], (BATCH, SEQ, DIM), jnp.float32)

    # rotary frequencies for positions [START_POS, START_POS+SEQ)
    theta = 1.0 / (10000.0 ** (jnp.arange(0, HEAD_DIM, 2, dtype=jnp.float32) / HEAD_DIM))
    pos = jnp.arange(START_POS, START_POS + SEQ, dtype=jnp.float32)
    ang = pos[:, None] * theta[None, :]          # (S, HEAD_DIM//2)
    cos, sin = jnp.cos(ang), jnp.sin(ang)

    # --- glue: per-head (evens, odds) row permutation of Wq/Wk -----------------
    perm, swap_idx, swap_sign = [], [], []
    for h in range(N_HEADS):
        base = h * HEAD_DIM
        perm += [base + 2 * i for i in range(HD2)]
        perm += [base + 2 * i + 1 for i in range(HD2)]
        # within-head half swap with sign for the rotate-half part of RoPE
        swap_idx += list(range(base + HD2, base + HEAD_DIM))
        swap_idx += list(range(base, base + HD2))
        swap_sign += [-1.0] * HD2 + [1.0] * HD2
    perm = jnp.array(perm, dtype=jnp.int32)
    swap_idx = jnp.array(swap_idx, dtype=jnp.int32)
    swap_sign = jnp.array(swap_sign, dtype=jnp.float32)

    scale = 1.0 / math.sqrt(HEAD_DIM)
    wqT_p = wq[perm, :].T                       # (D, D)
    wkT_p = wk[perm, :].T
    wqT_rot = wqT_p[:, swap_idx] * swap_sign[None, :]
    wkT_rot = wkT_p[:, swap_idx] * swap_sign[None, :]

    # fused bf16 weights; softmax scale constant-folded into the q column blocks
    wqkvT = jnp.concatenate([wqT_p * scale, wkT_p, wqT_rot * scale, wkT_rot, wv.T],
                            axis=1).astype(jnp.bfloat16)          # (D, 5D)
    woT = wo.T.astype(jnp.bfloat16)
    w12T = jnp.concatenate([w1.T, w2.T], axis=1).astype(jnp.bfloat16)  # (D, 2*HIDDEN)
    w3T = w3.T.astype(jnp.bfloat16)
    anw2d = attn_nw.reshape(1, DIM)
    fnw2d = ffn_nw.reshape(1, DIM)

    # full-width cos/sin: per head -> [cos, cos] (16 lanes), tiled over heads,
    # tiled over batch rows, then duplicated for the q|k lane layout.
    cos64 = jnp.tile(cos, (1, 2 * N_HEADS))      # (S, 64)
    sin64 = jnp.tile(sin, (1, 2 * N_HEADS))      # (S, 64)
    cos_bs = jnp.tile(cos64, (BATCH, 1))         # (BS, 64)
    sin_bs = jnp.tile(sin64, (BATCH, 1))
    cos2 = jnp.tile(cos_bs, (1, 2))              # (BS, 128) for q|k lanes
    sin2 = jnp.tile(sin_bs, (1, 2))

    # batch block-diagonal additive bias, pre-tiled per head: (BS, NH*BS)
    row_b = jnp.arange(BS, dtype=jnp.int32) // SEQ
    bias = jnp.where(row_b[:, None] == row_b[None, :], 0.0, NEG_INF).astype(jnp.float32)
    bias64 = jnp.tile(bias, (1, N_HEADS))

    # 0/1 head block-diagonal mask, reused for KB, VB and the denominator matmul
    blk = jnp.arange(DIM, dtype=jnp.int32) // HEAD_DIM
    mask = (blk[:, None] == blk[None, :]).astype(jnp.float32)     # (64, 64)

    x_flat = x.reshape(BS, DIM)

    out_flat = encoder_block(x_flat, cos2, sin2, bias64, mask, wqkvT, woT,
                             anw2d, fnw2d, w12T, w3T)
    out_flat = jax.block_until_ready(out_flat)
    out = out_flat.reshape(BATCH, SEQ, DIM)

    ref = ref_forward(x, cos, sin, wq, wk, wv, wo, attn_nw, ffn_nw, w1, w2, w3)
    assert out.shape == (BATCH, SEQ, DIM)
    assert bool(jnp.all(jnp.isfinite(out)))
    # bf16 weight/activation MXU dots + approx reciprocal -> 2e-2 tolerance
    assert bool(jnp.allclose(out, ref, atol=2e-2, rtol=2e-2)), (
        float(jnp.max(jnp.abs(out - ref))))
    print("KERNEL_OK")
</pallas_src>

<mosaic_0001>
module attributes {stable_mosaic.version = 11 : i64} {
  func.func @encoder_block_kernel(%arg0: i32, %arg1: memref<16x64xf32, #tpu.memory_space<vmem>>, %arg2: memref<16x128xf32, #tpu.memory_space<vmem>>, %arg3: memref<16x128xf32, #tpu.memory_space<vmem>>, %arg4: memref<16x64xf32, #tpu.memory_space<vmem>>, %arg5: memref<64x64xf32, #tpu.memory_space<vmem>>, %arg6: memref<64x320xbf16, #tpu.memory_space<vmem>>, %arg7: memref<64x64xbf16, #tpu.memory_space<vmem>>, %arg8: memref<1x64xf32, #tpu.memory_space<vmem>>, %arg9: memref<1x64xf32, #tpu.memory_space<vmem>>, %arg10: memref<64x128xbf16, #tpu.memory_space<vmem>>, %arg11: memref<64x64xbf16, #tpu.memory_space<vmem>>, %arg12: memref<16x64xf32, #tpu.memory_space<vmem>>) attributes {dimension_semantics = [#tpu.dimension_semantics<parallel>], iteration_bounds = array<i64: 1>, scalar_prefetch = 0 : i64, scratch_operands = 0 : i64, tpu.core_type = #tpu.core_type<tc>, window_params = [{transform_indices = @transform_0, window_bounds = array<i64: 16, 64>}, {transform_indices = @transform_1, window_bounds = array<i64: 16, 128>}, {transform_indices = @transform_2, window_bounds = array<i64: 16, 128>}, {pipeline_mode = #tpu.pipeline_mode<synchronous>, transform_indices = @transform_3, window_bounds = array<i64: 16, 64>}, {pipeline_mode = #tpu.pipeline_mode<synchronous>, transform_indices = @transform_4, window_bounds = array<i64: 64, 64>}, {pipeline_mode = #tpu.pipeline_mode<synchronous>, transform_indices = @transform_5, window_bounds = array<i64: 64, 320>}, {pipeline_mode = #tpu.pipeline_mode<synchronous>, transform_indices = @transform_6, window_bounds = array<i64: 64, 64>}, {pipeline_mode = #tpu.pipeline_mode<synchronous>, transform_indices = @transform_7, window_bounds = array<i64: 1, 64>}, {pipeline_mode = #tpu.pipeline_mode<synchronous>, transform_indices = @transform_8, window_bounds = array<i64: 1, 64>}, {pipeline_mode = #tpu.pipeline_mode<synchronous>, transform_indices = @transform_9, window_bounds = array<i64: 64, 128>}, {pipeline_mode = #tpu.pipeline_mode<synchronous>, transform_indices = @transform_10, window_bounds = array<i64: 64, 64>}, {transform_indices = @transform_11, window_bounds = array<i64: 16, 64>}]} {
    %c0 = arith.constant 0 : index
    %c0_0 = arith.constant 0 : index
    %0 = vector.load %arg1[%c0, %c0_0] : memref<16x64xf32, #tpu.memory_space<vmem>>, vector<16x64xf32>
    %c0_1 = arith.constant 0 : index
    %c0_2 = arith.constant 0 : index
    %1 = vector.load %arg5[%c0_1, %c0_2] : memref<64x64xf32, #tpu.memory_space<vmem>>, vector<64x64xf32>
    %c0_3 = arith.constant 0 : index
    %c0_4 = arith.constant 0 : index
    %2 = vector.load %arg8[%c0_3, %c0_4] : memref<1x64xf32, #tpu.memory_space<vmem>>, vector<1x64xf32>
    %3 = arith.mulf %0, %0 : vector<16x64xf32>
    %cst = arith.constant dense<0.000000e+00> : vector<16xf32>
    %4 = vector.multi_reduction <add>, %3, %cst [1] : vector<16x64xf32> to vector<16xf32>
    %5 = vector.shape_cast %4 : vector<16xf32> to vector<16x1xf32>
    %cst_5 = arith.constant 6.400000e+01 : f32
    %6 = vector.broadcast %cst_5 : f32 to vector<16x1xf32>
    %7 = arith.divf %5, %6 : vector<16x1xf32>
    %cst_6 = arith.constant 9.99999974E-6 : f32
    %8 = vector.broadcast %cst_6 : f32 to vector<16x1xf32>
    %9 = arith.addf %7, %8 : vector<16x1xf32>
    %10 = math.rsqrt %9 : vector<16x1xf32>
    %11 = vector.broadcast %10 : vector<16x1xf32> to vector<16x64xf32>
    %12 = arith.mulf %0, %11 : vector<16x64xf32>
    %13 = vector.broadcast %2 : vector<1x64xf32> to vector<16x64xf32>
    %14 = arith.mulf %13, %12 : vector<16x64xf32>
    %15 = arith.truncf %14 : vector<16x64xf32> to vector<16x64xbf16>
    %c0_7 = arith.constant 0 : index
    %c0_8 = arith.constant 0 : index
    %16 = vector.load %arg6[%c0_7, %c0_8] : memref<64x320xbf16, #tpu.memory_space<vmem>>, vector<64x320xbf16>
    %cst_9 = arith.constant dense<0.000000e+00> : vector<16x320xf32>
    %17 = tpu.matmul %15, %16, %cst_9 {dimension_numbers = #tpu.dot_dimension_numbers<[1], [0], [0], [1], [0, 0, 1, 1], [], []>} : vector<16x64xbf16>, vector<64x320xbf16>, vector<16x320xf32> -> vector<16x320xf32>
    %18 = vector.extract_strided_slice %17 {offsets = [0, 0], sizes = [16, 128], strides = [1, 1]} : vector<16x320xf32> to vector<16x128xf32>
    %19 = vector.extract_strided_slice %17 {offsets = [0, 128], sizes = [16, 128], strides = [1, 1]} : vector<16x320xf32> to vector<16x128xf32>
    %20 = vector.extract_strided_slice %17 {offsets = [0, 256], sizes = [16, 64], strides = [1, 1]} : vector<16x320xf32> to vector<16x64xf32>
    %c0_10 = arith.constant 0 : index
    %c0_11 = arith.constant 0 : index
    %21 = vector.load %arg2[%c0_10, %c0_11] : memref<16x128xf32, #tpu.memory_space<vmem>>, vector<16x128xf32>
    %22 = arith.mulf %18, %21 : vector<16x128xf32>
    %c0_12 = arith.constant 0 : index
    %c0_13 = arith.constant 0 : index
    %23 = vector.load %arg3[%c0_12, %c0_13] : memref<16x128xf32, #tpu.memory_space<vmem>>, vector<16x128xf32>
    %24 = arith.mulf %19, %23 : vector<16x128xf32>
    %25 = arith.addf %22, %24 : vector<16x128xf32>
    %26 = vector.extract_strided_slice %25 {offsets = [0, 0], sizes = [16, 64], strides = [1, 1]} : vector<16x128xf32> to vector<16x64xf32>
    %27 = vector.extract_strided_slice %25 {offsets = [0, 64], sizes = [16, 64], strides = [1, 1]} : vector<16x128xf32> to vector<16x64xf32>
    %28 = tpu.transpose %27, [1, 0] : vector<16x64xf32> -> vector<64x16xf32>
    %29 = tpu.concatenate %28, %28, %28, %28 in 1 : vector<64x16xf32>, vector<64x16xf32>, vector<64x16xf32>, vector<64x16xf32> -> vector<64x64xf32>
    %30 = arith.mulf %29, %1 : vector<64x64xf32>
    %cst_14 = arith.constant dense<0.000000e+00> : vector<16x64xf32>
    %31 = tpu.matmul %26, %30, %cst_14 {dimension_numbers = #tpu.dot_dimension_numbers<[1], [0], [0], [1], [0, 0, 1, 1], [], []>} : vector<16x64xf32>, vector<64x64xf32>, vector<16x64xf32> -> vector<16x64xf32>
    %c0_15 = arith.constant 0 : index
    %c0_16 = arith.constant 0 : index
    %32 = vector.load %arg4[%c0_15, %c0_16] : memref<16x64xf32, #tpu.memory_space<vmem>>, vector<16x64xf32>
    %33 = arith.addf %31, %32 : vector<16x64xf32>
    %cst_17 = arith.constant dense<0xFF800000> : vector<16xf32>
    %34 = vector.multi_reduction <maximumf>, %33, %cst_17 [1] : vector<16x64xf32> to vector<16xf32>
    %35 = vector.shape_cast %34 : vector<16xf32> to vector<16x1xf32>
    %36 = vector.broadcast %35 : vector<16x1xf32> to vector<16x64xf32>
    %37 = arith.subf %33, %36 : vector<16x64xf32>
    %38 = math.exp %37 : vector<16x64xf32>
    %cst_18 = arith.constant dense<0.000000e+00> : vector<16x64xf32>
    %39 = tpu.matmul %38, %1, %cst_18 {dimension_numbers = #tpu.dot_dimension_numbers<[1], [0], [0], [1], [0, 0, 1, 1], [], []>} : vector<16x64xf32>, vector<64x64xf32>, vector<16x64xf32> -> vector<16x64xf32>
    %40 = tpu.reciprocal %39 {approx = true} : vector<16x64xf32> -> vector<16x64xf32>
    %41 = arith.mulf %38, %40 : vector<16x64xf32>
    %42 = tpu.concatenate %20, %20, %20, %20 in 0 : vector<16x64xf32>, vector<16x64xf32>, vector<16x64xf32>, vector<16x64xf32> -> vector<64x64xf32>
    %43 = arith.mulf %42, %1 : vector<64x64xf32>
    %cst_19 = arith.constant dense<0.000000e+00> : vector<16x64xf32>
    %44 = tpu.matmul %41, %43, %cst_19 {dimension_numbers = #tpu.dot_dimension_numbers<[1], [0], [0], [1], [0, 0, 1, 1], [], []>} : vector<16x64xf32>, vector<64x64xf32>, vector<16x64xf32> -> vector<16x64xf32>
    %45 = arith.truncf %44 : vector<16x64xf32> to vector<16x64xbf16>
    %c0_20 = arith.constant 0 : index
    %c0_21 = arith.constant 0 : index
    %46 = vector.load %arg7[%c0_20, %c0_21] : memref<64x64xbf16, #tpu.memory_space<vmem>>, vector<64x64xbf16>
    %cst_22 = arith.constant dense<0.000000e+00> : vector<16x64xf32>
    %47 = tpu.matmul %45, %46, %cst_22 {dimension_numbers = #tpu.dot_dimension_numbers<[1], [0], [0], [1], [0, 0, 1, 1], [], []>} : vector<16x64xbf16>, vector<64x64xbf16>, vector<16x64xf32> -> vector<16x64xf32>
    %48 = arith.addf %0, %47 : vector<16x64xf32>
    %c0_23 = arith.constant 0 : index
    %c0_24 = arith.constant 0 : index
    %49 = vector.load %arg9[%c0_23, %c0_24] : memref<1x64xf32, #tpu.memory_space<vmem>>, vector<1x64xf32>
    %50 = arith.mulf %48, %48 : vector<16x64xf32>
    %cst_25 = arith.constant dense<0.000000e+00> : vector<16xf32>
    %51 = vector.multi_reduction <add>, %50, %cst_25 [1] : vector<16x64xf32> to vector<16xf32>
    %52 = vector.shape_cast %51 : vector<16xf32> to vector<16x1xf32>
    %cst_26 = arith.constant 6.400000e+01 : f32
    %53 = vector.broadcast %cst_26 : f32 to vector<16x1xf32>
    %54 = arith.divf %52, %53 : vector<16x1xf32>
    %cst_27 = arith.constant 9.99999974E-6 : f32
    %55 = vector.broadcast %cst_27 : f32 to vector<16x1xf32>
    %56 = arith.addf %54, %55 : vector<16x1xf32>
    %57 = math.rsqrt %56 : vector<16x1xf32>
    %58 = vector.broadcast %57 : vector<16x1xf32> to vector<16x64xf32>
    %59 = arith.mulf %48, %58 : vector<16x64xf32>
    %60 = vector.broadcast %49 : vector<1x64xf32> to vector<16x64xf32>
    %61 = arith.mulf %60, %59 : vector<16x64xf32>
    %62 = arith.truncf %61 : vector<16x64xf32> to vector<16x64xbf16>
    %c0_28 = arith.constant 0 : index
    %c0_29 = arith.constant 0 : index
    %63 = vector.load %arg10[%c0_28, %c0_29] : memref<64x128xbf16, #tpu.memory_space<vmem>>, vector<64x128xbf16>
    %cst_30 = arith.constant dense<0.000000e+00> : vector<16x128xf32>
    %64 = tpu.matmul %62, %63, %cst_30 {dimension_numbers = #tpu.dot_dimension_numbers<[1], [0], [0], [1], [0, 0, 1, 1], [], []>} : vector<16x64xbf16>, vector<64x128xbf16>, vector<16x128xf32> -> vector<16x128xf32>
    %65 = vector.extract_strided_slice %64 {offsets = [0, 0], sizes = [16, 64], strides = [1, 1]} : vector<16x128xf32> to vector<16x64xf32>
    %66 = vector.extract_strided_slice %64 {offsets = [0, 64], sizes = [16, 64], strides = [1, 1]} : vector<16x128xf32> to vector<16x64xf32>
    %67 = arith.negf %65 : vector<16x64xf32>
    %68 = math.exp %67 : vector<16x64xf32>
    %cst_31 = arith.constant 1.000000e+00 : f32
    %69 = vector.broadcast %cst_31 : f32 to vector<16x64xf32>
    %70 = arith.addf %69, %68 : vector<16x64xf32>
    %71 = arith.divf %69, %70 : vector<16x64xf32>
    %72 = arith.mulf %65, %71 : vector<16x64xf32>
    %73 = arith.mulf %72, %66 : vector<16x64xf32>
    %74 = arith.truncf %73 : vector<16x64xf32> to vector<16x64xbf16>
    %c0_32 = arith.constant 0 : index
    %c0_33 = arith.constant 0 : index
    %75 = vector.load %arg11[%c0_32, %c0_33] : memref<64x64xbf16, #tpu.memory_space<vmem>>, vector<64x64xbf16>
    %cst_34 = arith.constant dense<0.000000e+00> : vector<16x64xf32>
    %76 = tpu.matmul %74, %75, %cst_34 {dimension_numbers = #tpu.dot_dimension_numbers<[1], [0], [0], [1], [0, 0, 1, 1], [], []>} : vector<16x64xbf16>, vector<64x64xbf16>, vector<16x64xf32> -> vector<16x64xf32>
    %77 = arith.addf %48, %76 : vector<16x64xf32>
    %c0_35 = arith.constant 0 : index
    %c0_36 = arith.constant 0 : index
    %78 = vector.load %arg12[%c0_35, %c0_36] : memref<16x64xf32, #tpu.memory_space<vmem>>, vector<16x64xf32>
    tpu.vector_store %arg12[%c0_35, %c0_36], %77 {strides = array<i32>} : memref<16x64xf32, #tpu.memory_space<vmem>>, vector<16x64xf32>,
    return
  }
  func.func @transform_0(%arg0: i32) -> (i32, i32) {
    %c0_i32 = arith.constant 0 : i32
    %c0_i32_0 = arith.constant 0 : i32
    return %arg0, %c0_i32 : i32, i32
  }
  func.func @transform_1(%arg0: i32) -> (i32, i32) {
    %c0_i32 = arith.constant 0 : i32
    %c0_i32_0 = arith.constant 0 : i32
    return %arg0, %c0_i32 : i32, i32
  }
  func.func @transform_2(%arg0: i32) -> (i32, i32) {
    %c0_i32 = arith.constant 0 : i32
    %c0_i32_0 = arith.constant 0 : i32
    return %arg0, %c0_i32 : i32, i32
  }
  func.func @transform_3(%arg0: i32) -> (i32, i32) {
    %c0_i32 = arith.constant 0 : i32
    %c0_i32_0 = arith.constant 0 : i32
    %c0_i32_1 = arith.constant 0 : i32
    return %c0_i32, %c0_i32_0 : i32, i32
  }
  func.func @transform_4(%arg0: i32) -> (i32, i32) {
    %c0_i32 = arith.constant 0 : i32
    %c0_i32_0 = arith.constant 0 : i32
    %c0_i32_1 = arith.constant 0 : i32
    return %c0_i32, %c0_i32_0 : i32, i32
  }
  func.func @transform_5(%arg0: i32) -> (i32, i32) {
    %c0_i32 = arith.constant 0 : i32
    %c0_i32_0 = arith.constant 0 : i32
    %c0_i32_1 = arith.constant 0 : i32
    return %c0_i32, %c0_i32_0 : i32, i32
  }
  func.func @transform_6(%arg0: i32) -> (i32, i32) {
    %c0_i32 = arith.constant 0 : i32
    %c0_i32_0 = arith.constant 0 : i32
    %c0_i32_1 = arith.constant 0 : i32
    return %c0_i32, %c0_i32_0 : i32, i32
  }
  func.func @transform_7(%arg0: i32) -> (i32, i32) {
    %c0_i32 = arith.constant 0 : i32
    %c0_i32_0 = arith.constant 0 : i32
    %c0_i32_1 = arith.constant 0 : i32
    return %c0_i32, %c0_i32_0 : i32, i32
  }
  func.func @transform_8(%arg0: i32) -> (i32, i32) {
    %c0_i32 = arith.constant 0 : i32
    %c0_i32_0 = arith.constant 0 : i32
    %c0_i32_1 = arith.constant 0 : i32
    return %c0_i32, %c0_i32_0 : i32, i32
  }
  func.func @transform_9(%arg0: i32) -> (i32, i32) {
    %c0_i32 = arith.constant 0 : i32
    %c0_i32_0 = arith.constant 0 : i32
    %c0_i32_1 = arith.constant 0 : i32
    return %c0_i32, %c0_i32_0 : i32, i32
  }
  func.func @transform_10(%arg0: i32) -> (i32, i32) {
    %c0_i32 = arith.constant 0 : i32
    %c0_i32_0 = arith.constant 0 : i32
    %c0_i32_1 = arith.constant 0 : i32
    return %c0_i32, %c0_i32_0 : i32, i32
  }
  func.func @transform_11(%arg0: i32) -> (i32, i32) {
    %c0_i32 = arith.constant 0 : i32
    %c0_i32_0 = arith.constant 0 : i32
    return %arg0, %c0_i32 : i32, i32
  }
}

</mosaic_0001>

<bundles_post_ra>
// kernel: tpu_custom_call.1
= control target key start
LH: loop header
LB: loop body
LE: loop exit
PB: predicated region body
PF: predicated region fallthrough
CT: control target
= control target key end

     0   :  { %16 = vsyncpa [#allocation3], 0  ;;  %s1637_s0 = inlined_call_operand.hbm [shape: f32[16,64], index: 0, kind: input, shape index: {}]   ;;  %s1638_s1 = inlined_call_operand.hbm [shape: f32[16,128], index: 1, kind: input, shape index: {}]   ;;  %s1639_s2 = inlined_call_operand.hbm [shape: f32[16,128], index: 2, kind: input, shape index: {}]   ;;  %s1640_s3 = inlined_call_operand.hbm [shape: f32[16,64], index: 3, kind: input, shape index: {}]   ;;  %s1641_s4 = inlined_call_operand.hbm [shape: f32[64,64], index: 4, kind: input, shape index: {}]   ;;  %s1642_s5 = inlined_call_operand.hbm [shape: bf16[64,320], index: 5, kind: input, shape index: {}]   ;;  %s1643_s6 = inlined_call_operand.hbm [shape: bf16[64,64], index: 6, kind: input, shape index: {}]   ;;  %s1644_s7 = inlined_call_operand.vmem [shape: f32[1,64], index: 7, kind: input, shape index: {}]   ;;  %s1645_s8 = inlined_call_operand.vmem [shape: f32[1,64], index: 8, kind: input, shape index: {}]   ;;  %s1646_s9 = inlined_call_operand.hbm [shape: bf16[64,128], index: 9, kind: input, shape index: {}]   ;;  %s1647_s10 = inlined_call_operand.hbm [shape: bf16[64,64], index: 10, kind: input, shape index: {}]   ;;  %s1648_s11 = inlined_call_operand.hbm [shape: f32[16,64], index: 11, kind: output, shape index: {}]  }
   0x1   :  { %17 = vsyncpa [#allocation6], 0 }
   0x2   :  { %18 = vsyncpa [#allocation9], 0 }
   0x3   :  { %19 = vsyncpa [#allocation12], 0 }
   0x4   :  { %20 = vsyncpa [#allocation15], 0 }
   0x5   :  { %21 = vsyncpa [#allocation4], 0  ;;  %s39_s19 = sshll.u32 %s1638_s1, 4  ;;  %s1344_s20 = smov [#allocation5]   ;;  %s40_s19 = int_to_ptr.hbm [resolvable:$true] %s39_s19 }
   0x6   :  { %s41_s21 = sshll.u32 %s1344_s20, 4  ;;  %s65_s24 = sshll.u32 %s1640_s3, 4  ;;  %s42_s21 = int_to_ptr.vmem [resolvable:$true] %s41_s21  ;;  %s66_s24 = int_to_ptr.hbm [resolvable:$true] %s65_s24 }
   0x7   :  { %s1345_s25 = smov 128   ;;  %s1346_s26 = smov 8  }
   0x8   :  { %47 = dma.hbm_to_vmem [thread:$0]  %s40_s19, 256, %s42_s21, [#allocation6], %s1345_s25, %s1345_s25, %s1346_s26  }
   0x9   :  { %s1347_s27 = smov [#allocation8]   ;;  %s91_s1 = sshll.u32 %s1642_s5, 4  ;;  %s92_s1 = int_to_ptr.hbm [resolvable:$true] %s91_s1 }
   0xa   :  { %s67_s28 = sshll.u32 %s1347_s27, 4  ;;  %s1348_s3 = smov [#allocation11]   ;;  %s68_s28 = int_to_ptr.vmem [resolvable:$true] %s67_s28 }
   0xb   :  { %73 = dma.hbm_to_vmem [thread:$0]  %s66_s24, 256, %s68_s28, [#allocation9], %s1345_s25, %s1345_s25, %s1346_s26  }
   0xc   :  { %s93_s12 = sshll.u32 %s1348_s3, 4  ;;  %s1349_s13 = smov 192   ;;  %s94_s12 = int_to_ptr.vmem [resolvable:$true] %s93_s12 }
   0xd   :  { %s1350_s14 = smov 12   ;;  %s121_s17 = sshll.u32 %s1646_s9, 4  ;;  %s122_s17 = int_to_ptr.hbm [resolvable:$true] %s121_s17 }
   0xe   :  { %99 = dma.hbm_to_vmem [thread:$0]  %s92_s1, 1536, %s94_s12, [#allocation12], %s1349_s13, %s1349_s13, %s1350_s14  }
   0xf   :  { %s1351_s18 = smov [#allocation14]   ;;  %s26_s21 = sshll.u32 %s1637_s0, 4  ;;  %s27_s21 = int_to_ptr.hbm [resolvable:$true] %s26_s21 }
  0x10   :  { %s123_s19 = sshll.u32 %s1351_s18, 4  ;;  %s1352_s22 = smov 64   ;;  %s124_s19 = int_to_ptr.vmem [resolvable:$true] %s123_s19 }
  0x11   :  { %s1353_s23 = smov 4   ;;  %s52_s28 = sshll.u32 %s1639_s2, 4  ;;  %s53_s28 = int_to_ptr.hbm [resolvable:$true] %s52_s28 }
  0x12   :  { %129 = dma.hbm_to_vmem [thread:$0]  %s122_s17, 512, %s124_s19, [#allocation15], %s1352_s22, %s1352_s22, %s1353_s23  }
  0x13   :  { %s1354_s9 = smov [#allocation2]   ;;  %s1355_s0 = smov [#allocation7]  }
  0x14   :  { %s28_s29 = sshll.u32 %s1354_s9, 4  ;;  %s54_s30 = sshll.u32 %s1355_s0, 4  ;;  %s29_s29 = int_to_ptr.vmem [resolvable:$true] %s28_s29  ;;  %s55_s30 = int_to_ptr.vmem [resolvable:$true] %s54_s30 }
  0x15   :  { %34 = dma.hbm_to_vmem [thread:$0]  %s27_s21, 256, %s29_s29, [#allocation3], %s1345_s25, %s1345_s25, %s1346_s26  }
  0x16   :  { %s78_s12 = sshll.u32 %s1641_s4, 4  ;;  %s104_s14 = sshll.u32 %s1643_s6, 4  ;;  %s79_s12 = int_to_ptr.hbm [resolvable:$true] %s78_s12  ;;  %s105_s14 = int_to_ptr.hbm [resolvable:$true] %s104_s14 }
  0x17   :  { %60 = dma.hbm_to_vmem [thread:$0]  %s53_s28, 256, %s55_s30, [#allocation6], %s1345_s25, %s1345_s25, %s1346_s26  }
  0x18   :  { %s1356_s15 = smov [#allocation10]   ;;  %s1357_s17 = smov [#allocation13]  }
  0x19   :  { %s80_s16 = sshll.u32 %s1356_s15, 4  ;;  %s106_s4 = sshll.u32 %s1357_s17, 4  ;;  %s81_s16 = int_to_ptr.vmem [resolvable:$true] %s80_s16  ;;  %s107_s4 = int_to_ptr.vmem [resolvable:$true] %s106_s4 }
  0x1a   :  { %86 = dma.hbm_to_vmem [thread:$0]  %s79_s12, 1024, %s81_s16, [#allocation9], %s1345_s25, %s1345_s25, %s1346_s26  }
  0x1b   :  { %s134_s5 = sshll.u32 %s1647_s10, 4  ;;  %s1358_s6 = smov [#allocation16]   ;;  %s135_s5 = int_to_ptr.hbm [resolvable:$true] %s134_s5 }
  0x1c   :  { %112 = dma.hbm_to_vmem [thread:$0]  %s105_s14, 512, %s107_s4, [#allocation12], %s1352_s22, %s1352_s22, %s1353_s23  }
  0x1d   :  { %s136_s20 = sshll.u32 %s1358_s6, 4  ;;  %s137_s20 = int_to_ptr.vmem [resolvable:$true] %s136_s20 }
  0x1e   :  { %142 = dma.hbm_to_vmem [thread:$0]  %s135_s5, 512, %s137_s20, [#allocation15], %s1352_s22, %s1352_s22, %s1353_s23  }
  0x1f   :  { %1332 = dma.done.wait [#allocation3], 256  }
  0x20   :  { %1333 = vsyncadd [#allocation3], 4294967040 }
  0x21   :  { %1334 = dma.done.wait [#allocation6], 512  }
  0x22   :  { %1335 = vsyncadd [#allocation6], 4294966784 }
  0x23   :  { %1336 = dma.done.wait [#allocation9], 1280  }
  0x24   :  { %1337 = vsyncadd [#allocation9], 4294966016 }
  0x25   :  { %1338 = dma.done.wait [#allocation12], 2048  }
  0x26   :  { %1339 = vsyncadd [#allocation12], 4294965248 }
  0x27   :  { %1340 = dma.done.wait [#allocation15], 1024  }
  0x28   :  { %1341 = vsyncadd [#allocation15], 4294966272  ;;  %v1475_v0 = vld [vmem:[#allocation2] sm:$0xff]  ;;  %vm193_vm0 = vcmask 523264   ;;  %v1479_v2 = vld [vmem:[#allocation2 + $0x8] sm:$0xff]  ;;  %v1359_v6 = vmov 64.0  }
  0x29   :  { %v191_v1 = vmul.f32 %v1475_v0, %v1475_v0  ;;  %v192_v4 = vmul.f32 %v1479_v2, %v1479_v2  ;;  %1066 = vrcp.f32 %v1359_v6  ;;  %v947_v10 = vld [vmem:[#allocation11 + $0x48] sm:$0xf]  ;;  %v1029_v11 = vld [vmem:[#allocation11 + $0x50] sm:$0xf0]  ;;  %v1028_v12 = vld [vmem:[#allocation11 + $0x4c] sm:$0xf] }
  0x2a   :  { %v948_v13 = vor.u32 %v1029_v11, %v947_v10  ;;  %v949_v14 = vld [vmem:[#allocation11 + $0x54] sm:$0xf0]  ;;  %v955_v15 = vld [vmem:[#allocation11 + $0x50] sm:$0xf]  ;;  %v1030_v16 = vld [vmem:[#allocation11 + $0x58] sm:$0xf0] }
  0x2b   :  { %v194_v3 = vsel %vm193_vm0, %v191_v1, 0.0  ;;  %v197_v5 = vsel %vm193_vm0, %v192_v4, 0.0  ;;  %v952_v17 = vor.u32 %v1028_v12, %v949_v14  ;;  %v956_v18 = vor.u32 %v1030_v16, %v955_v15  ;;  %v935_v20 = vld [vmem:[#allocation11 + $0x30] sm:$0xf]  ;;  %v1026_v21 = vld [vmem:[#allocation11 + $0x38] sm:$0xf0] }
  0x2c   :  { %195 = vadd.xlane.f32.xlu0 %v194_v3  ;;  %326 = vmatpush.bf16.msra.mxu0 %v948_v13  ;;  %v1025_v22 = vld [vmem:[#allocation11 + $0x34] sm:$0xf]  ;;  %v936_v23 = vor.u32 %v1026_v21, %v935_v20  ;;  %v937_v24 = vld [vmem:[#allocation11 + $0x3c] sm:$0xf0]  ;;  %v943_v25 = vld [vmem:[#allocation11 + $0x38] sm:$0xf] }
  0x2d   :  { %340 = vmatpush.bf16.msra.mxu1 %v952_v17  ;;  %354 = vmatpush.bf16.msra.mxu2 %v956_v18  ;;  %v1027_v26 = vld [vmem:[#allocation11 + $0x40] sm:$0xf0]  ;;  %v940_v27 = vor.u32 %v1025_v22, %v937_v24  ;;  %v923_v30 = vld [vmem:[#allocation11 + $0x18] sm:$0xf]  ;;  %v1022_v32 = vld [vmem:[#allocation11 + $0x1c] sm:$0xf] }
  0x2e   :  { %v944_v28 = vor.u32 %v1027_v26, %v943_v25  ;;  %v1023_v31 = vld [vmem:[#allocation11 + $0x20] sm:$0xf0]  ;;  %v925_v34 = vld [vmem:[#allocation11 + $0x24] sm:$0xf0]  ;;  %v931_v35 = vld [vmem:[#allocation11 + $0x20] sm:$0xf] }
  0x2f   :  { %v1067_v7 = vpop.eup %1066  ;;  %v924_v33 = vor.u32 %v1023_v31, %v923_v30  ;;  %v1024_v36 = vld [vmem:[#allocation11 + $0x28] sm:$0xf0]  ;;  %v928_v37 = vor.u32 %v1022_v32, %v925_v34  ;;  %v911_v40 = vld [vmem:[#allocation11] sm:$0xf]  ;;  %v1019_v42 = vld [vmem:[#allocation11 + $0x4] sm:$0xf] }
  0x30   :  { %v201_v8 = vmul.f32 64.0, %v1067_v7  ;;  %327 = vmatpush.bf16.msra.mxu0 %v936_v23  ;;  %vm205_vm1 = vweird.f32 %v1067_v7  ;;  %v932_v38 = vor.u32 %v1024_v36, %v931_v35  ;;  %v1020_v41 = vld [vmem:[#allocation11 + $0x8] sm:$0xf0]  ;;  %v913_v44 = vld [vmem:[#allocation11 + $0xc] sm:$0xf0]  ;;  %v1497_v13 = vld [vmem:[#allocation10 + $0x38] sm:$0xff] }
  0x31   :  { %341 = vmatpush.bf16.msra.mxu1 %v940_v27  ;;  %355 = vmatpush.bf16.msra.mxu2 %v944_v28  ;;  %v912_v43 = vor.u32 %v1020_v41, %v911_v40  ;;  %v919_v45 = vld [vmem:[#allocation11 + $0x8] sm:$0xf]  ;;  %v1021_v46 = vld [vmem:[#allocation11 + $0x10] sm:$0xf0]  ;;  %v916_v48 = vor.u32 %v1019_v42, %v913_v44  ;;  %v1506_v16 = vld [vmem:[#allocation10 + $0x20] sm:$0xff]  ;;  %s1361_s23 = smov 32  }
  0x32   :  { %v202_v9 = vsub.f32 1.0, %v201_v8  ;;  %v920_v49 = vor.u32 %v1021_v46, %v919_v45  ;;  %v1500_v14 = vld [vmem:[#allocation10 + $0x30] sm:$0xff]  ;;  %v1503_v15 = vld [vmem:[#allocation10 + $0x28] sm:$0xff]  ;;  %v1509_v17 = vld [vmem:[#allocation10 + $0x18] sm:$0xff]  ;;  %s1362_s24 = smov 48   ;;  %vm503_vm8 = vcmask 261120  }
  0x33   :  { %v1512_v18 = vld [vmem:[#allocation10 + $0x10] sm:$0xff]  ;;  %v1518_v20 = vld [vmem:[#allocation10] sm:$0xff]  ;;  %v365_v28 = vld [vmem:[#allocation5 + $0x8] sm:$0xff]  ;;  %vm494_vm9 = vcmask 130048   ;;  %vm512_vm10 = vcmask 392192   ;;  %s892_s0 = sshll.u32 %s1648_s11, 4  ;;  %s893_s0 = int_to_ptr.hbm [resolvable:$true] %s892_s0 }
  0x34   :  { %198 = vadd.xlane.f32.xlu0 %v197_v5  ;;  %v203_v19 = vmul.f32 %v1067_v7, %v202_v9  ;;  %328 = vmatpush.bf16.msra.mxu0 %v924_v33  ;;  %v364_v21 = vld [vmem:[#allocation5] sm:$0xff]  ;;  %v368_v22 = vld [vmem:[#allocation7] sm:$0xff] }
  0x35   :  { %342 = vmatpush.bf16.msra.mxu1 %v928_v37  ;;  %356 = vmatpush.bf16.msra.mxu2 %v932_v38 }
  0x36   :  { %v204_v29 = vadd.f32 %v1067_v7, %v203_v19  ;;  %v1515_v19 = vld [vmem:[#allocation10 + $0x8] sm:$0xff] }
  0x38   :  { %v1485_v39 = vsel %vm205_vm1, %v1067_v7, %v204_v29  ;;  %329 = vmatpush.bf16.msra.mxu0 %v912_v43  ;;  %v1064_v7 = vld [vmem:[%s1644_s7] ss:$0 sm:$0xff]  ;;  %v369_v29 = vld [vmem:[#allocation7 + $0x8] sm:$0xff]  ;;  %s1360_s7 = smov 16  }
  0x39   :  { %343 = vmatpush.bf16.msra.mxu1 %v916_v48  ;;  %357 = vmatpush.bf16.msra.mxu2 %v920_v49 }
  0x3c   :  { %584 = vmatpush.msrb.mxu0 %v1497_v13 }
  0x3e   :  { %585 = vmatpush.msrb.mxu0 %v1500_v14 }
  0x40   :  { %586 = vmatpush.msrb.mxu0 %v1503_v15 }
  0x42   :  { %587 = vmatpush.msrb.mxu0 %v1506_v16 }
  0x44   :  { %588 = vmatpush.msrb.mxu0 %v1509_v17 }
  0x46   :  { %589 = vmatpush.msrb.mxu0 %v1512_v18 }
  0x48   :  { %590 = vmatpush.msrb.mxu0 %v1515_v19 }
  0x4a   :  { %591 = vmatpush.msrb.mxu0 %v1518_v20 }
  0x9f   :  { %v196_v47 = vpop.xlane.xlu0 %195 }
  0xa0   :  { %v207_v50 = vmul.f32 %v1485_v39, %v196_v47 }
  0xa2   :  { %v209_v51 = vadd.f32 1e-05, %v207_v50 }
  0xa4   :  { %1068 = vrsqrt.f32 %v209_v51  ;;  %vm217_vm3 = vweird.f32 %v209_v51 }
  0xa7   :  { %v199_v52 = vpop.xlane.xlu0 %198 }
  0xa8   :  { %v208_v53 = vmul.f32 %v1485_v39, %v199_v52 }
  0xaa   :  { %v1069_v54 = vpop.eup %1068  ;;  %v210_v55 = vadd.f32 1e-05, %v208_v53 }
  0xab   :  { %v212_v56 = vmul.f32 %v1069_v54, %v209_v51  ;;  %vm218_vm2 = vweird.f32 %v1069_v54 }
  0xac   :  { %1070 = vrsqrt.f32 %v210_v55  ;;  %vm219_vm4 = vmor %vm217_vm3, %vm218_vm2  ;;  %vm227_vm6 = vweird.f32 %v210_v55 }
  0xad   :  { %v213_v57 = vmul.f32 %v1069_v54, %v212_v56 }
  0xaf   :  { %v214_v58 = vmul.f32 0.5, %v213_v57 }
  0xb1   :  { %v215_v59 = vsub.f32 1.5, %v214_v58 }
  0xb2   :  { %v1071_v60 = vpop.eup %1070 }
  0xb3   :  { %v222_v61 = vmul.f32 %v1071_v60, %v210_v55  ;;  %v216_v62 = vmul.f32 %v1069_v54, %v215_v59  ;;  %vm228_vm5 = vweird.f32 %v1071_v60 }
  0xb4   :  { %vm229_vm7 = vmor %vm227_vm6, %vm228_vm5 }
  0xb5   :  { %v223_v63 = vmul.f32 %v1071_v60, %v222_v61  ;;  %v220_v3 = vsel %vm219_vm4, %v1069_v54, %v216_v62 }
  0xb6   :  { %v231_v6 = vmul.f32 %v220_v3, %v1475_v0 }
  0xb7   :  { %v224_v1 = vmul.f32 0.5, %v223_v63 }
  0xb8   :  { %v236_v10 = vmul.f32 %v1064_v7, %v231_v6 }
  0xb9   :  { %v225_v4 = vsub.f32 1.5, %v224_v1 }
  0xbb   :  { %v226_v5 = vmul.f32 %v1071_v60, %v225_v4 }
  0xbd   :  { %v230_v8 = vsel %vm229_vm7, %v1071_v60, %v226_v5 }
  0xbe   :  { %v232_v9 = vmul.f32 %v230_v8, %v1479_v2 }
  0xc0   :  { %v237_v11 = vmul.f32 %v1064_v7, %v232_v9 }
  0xc2   :  { %v238_v12 = vpack.c.bf16 %v237_v11, %v236_v10 }
  0xc4   :  { %957 = vmatmul.msk.bf16.vlgmr.msra.gmra.mxu0 %vm193_vm0, %v238_v12  ;;  %958 = vmatmul.msk.bf16.vlgmr.msra.gmra.mxu1 %vm193_vm0, %v238_v12 }
  0xc5   :  { %959 = vmatmul.msk.bf16.vlgmr.msra.gmra.mxu2 %vm193_vm0, %v238_v12 }
 0x141   :  { %v331_v23 = vpop.f32.mrf.mxu0  ;;  %v345_v24 = vpop.f32.mrf.mxu1 }
 0x142   :  { %v366_v25 = vmul.f32 %v364_v21, %v331_v23  ;;  %v370_v26 = vmul.f32 %v368_v22, %v345_v24 }
 0x144   :  { %v1521_v27 = vadd.f32 %v370_v26, %v366_v25 }
 0x146   :  { %376 = vrot.lane.b32.xlu1 %v1521_v27, %s1352_s22 }
 0x148   :  { %v359_v30 = vpop.f32.mrf.mxu2 }
 0x149   :  { %v333_v31 = vpop.f32.mrf.mxu0  ;;  %v347_v32 = vpop.f32.mrf.mxu1  ;;  %v609_v38 = vmul.f32 %v359_v30, %v1500_v14  ;;  %v607_v41 = vmul.f32 %v359_v30, %v1506_v16  ;;  %v605_v43 = vmul.f32 %v359_v30, %v1512_v18  ;;  %v603_v45 = vmul.f32 %v359_v30, %v1518_v20 }
 0x14a   :  { %v367_v33 = vmul.f32 %v365_v28, %v333_v31  ;;  %v371_v34 = vmul.f32 %v369_v29, %v347_v32 }
 0x14c   :  { %v1525_v35 = vadd.f32 %v371_v34, %v367_v33 }
 0x14e   :  { %378 = vrot.lane.b32.xlu1 %v1525_v35, %s1352_s22 }
 0x150   :  { %v361_v36 = vpop.f32.mrf.mxu2 }
 0x151   :  { %v610_v37 = vmul.f32 %v361_v36, %v1497_v13  ;;  %v608_v40 = vmul.f32 %v361_v36, %v1503_v15  ;;  %v606_v42 = vmul.f32 %v361_v36, %v1509_v17  ;;  %v604_v44 = vmul.f32 %v361_v36, %v1515_v19 }
 0x153   :  { %625 = vmatpush.msrb.mxu1 %v610_v37 }
 0x155   :  { %626 = vmatpush.msrb.mxu1 %v609_v38 }
 0x157   :  { %627 = vmatpush.msrb.mxu1 %v608_v40 }
 0x159   :  { %628 = vmatpush.msrb.mxu1 %v607_v41 }
 0x15b   :  { %629 = vmatpush.msrb.mxu1 %v606_v42 }
 0x15d   :  { %630 = vmatpush.msrb.mxu1 %v605_v43 }
 0x15f   :  { %631 = vmatpush.msrb.mxu1 %v604_v44 }
 0x161   :  { %632 = vmatpush.msrb.mxu1 %v603_v45 }
 0x1b8   :  { %v377_v46 = vpop.permute.xlu1 %376 }
 0x1b9   :  { %382 = vxpose.xlu2.b32.start [1/2] (short) (narrow) %v377_v46, 64 }
 0x1c0   :  { %v379_v47 = vpop.permute.xlu1 %378 }
 0x1c1   :  { %383 = vxpose.xlu2.b32.end [2/2] (short) (narrow) %v379_v47, 64 }
 0x252   :  { %v1537_v48 = vpop.trf.xlu2 }
 0x25a   :  { %v1539_v49 = vpop.trf.xlu2 }
 0x262   :  { %v1541_v50 = vpop.trf.xlu2 }
 0x26a   :  { %v1543_v51 = vpop.trf.xlu2 }
 0x272   :  { %v402_v52 = vpop.trf.xlu2 }
 0x273   :  { %430 = vrot.lane.b32.xlu1 %v402_v52, %s1360_s7 }
 0x27a   :  { %v403_v53 = vpop.trf.xlu2 }
 0x27b   :  { %454 = vrot.lane.b32.xlu1 %v402_v52, %s1361_s23  ;;  %432 = vrot.lane.b32.xlu0 %v403_v53, %s1360_s7 }
 0x282   :  { %v404_v54 = vpop.trf.xlu2 }
 0x283   :  { %478 = vrot.lane.b32.xlu1 %v402_v52, %s1362_s24  ;;  %456 = vrot.lane.b32.xlu0 %v403_v53, %s1361_s23 }
 0x284   :  { %434 = vrot.lane.b32.xlu2 %v404_v54, %s1360_s7 }
 0x28a   :  { %v405_v55 = vpop.trf.xlu2 }
 0x28b   :  { %426 = vrot.lane.b32.xlu1 %v1541_v50, %s1360_s7  ;;  %480 = vrot.lane.b32.xlu0 %v403_v53, %s1362_s24 }
 0x293   :  { %450 = vrot.lane.b32.xlu1 %v1541_v50, %s1361_s23  ;;  %428 = vrot.lane.b32.xlu0 %v1543_v51, %s1360_s7 }
 0x29b   :  { %474 = vrot.lane.b32.xlu1 %v1541_v50, %s1362_s24  ;;  %452 = vrot.lane.b32.xlu0 %v1543_v51, %s1361_s23 }
 0x2a3   :  { %476 = vrot.lane.b32.xlu0 %v1543_v51, %s1362_s24  ;;  %458 = vrot.lane.b32.xlu1 %v404_v54, %s1361_s23 }
 0x2ab   :  { %424 = vrot.lane.b32.xlu0 %v1539_v49, %s1360_s7  ;;  %482 = vrot.lane.b32.xlu1 %v404_v54, %s1362_s24 }
 0x2b3   :  { %448 = vrot.lane.b32.xlu0 %v1539_v49, %s1361_s23  ;;  %460 = vrot.lane.b32.xlu1 %v405_v55, %s1361_s23 }
 0x2bb   :  { %484 = vrot.lane.b32.xlu1 %v405_v55, %s1362_s24  ;;  %436 = vrot.lane.b32.xlu0 %v405_v55, %s1360_s7 }
 0x2c3   :  { %422 = vrot.lane.b32.xlu1 %v1537_v48, %s1360_s7  ;;  %472 = vrot.lane.b32.xlu0 %v1539_v49, %s1362_s24 }
 0x2cb   :  { %446 = vrot.lane.b32.xlu1 %v1537_v48, %s1361_s23  ;;  %470 = vrot.lane.b32.xlu0 %v1537_v48, %s1362_s24 }
 0x2de   :  { %v435_v22 = vpop.permute.xlu2 %434 }
 0x2df   :  { %v501_v25 = vsel %vm494_vm9, %v404_v54, %v435_v22  ;;  %v1031_v22 = vld [vmem:[#allocation13] sm:$0xff] }
 0x2e5   :  { %v431_v56 = vpop.permute.xlu1 %430 }
 0x2e6   :  { %v499_v57 = vsel %vm494_vm9, %v402_v52, %v431_v56 }
 0x2ed   :  { %v455_v58 = vpop.permute.xlu1 %454  ;;  %v433_v59 = vpop.permute.xlu0 %432 }
 0x2ee   :  { %v508_v60 = vsel %vm503_vm8, %v499_v57, %v455_v58  ;;  %v500_v30 = vsel %vm494_vm9, %v403_v53, %v433_v59 }
 0x2f5   :  { %v479_v61 = vpop.permute.xlu1 %478  ;;  %v457_v62 = vpop.permute.xlu0 %456 }
 0x2f6   :  { %v517_v63 = vsel %vm512_vm10, %v508_v60, %v479_v61  ;;  %v509_v33 = vsel %vm503_vm8, %v500_v30, %v457_v62 }
 0x2fd   :  { %v427_v1 = vpop.permute.xlu1 %426  ;;  %v481_v3 = vpop.permute.xlu0 %480 }
 0x2fe   :  { %v518_v36 = vsel %vm512_vm10, %v509_v33, %v481_v3  ;;  %v497_v44 = vsel %vm494_vm9, %v1541_v50, %v427_v1 }
 0x2ff   :  { %v526_v43 = vmul.f32 %v518_v36, %v1503_v15  ;;  %v1038_v36 = vld [vmem:[#allocation14 + $0x18] sm:$0xff] }
 0x305   :  { %v451_v4 = vpop.permute.xlu1 %450  ;;  %v429_v5 = vpop.permute.xlu0 %428 }
 0x306   :  { %v498_v38 = vsel %vm494_vm9, %v1543_v51, %v429_v5  ;;  %v506_v45 = vsel %vm503_vm8, %v497_v44, %v451_v4  ;;  %v1034_v5 = vld [vmem:[#allocation13 + $0x18] sm:$0xff] }
 0x307   :  { %680 = vmatpush.bf16.msrb.mxu2 %v1034_v5 }
 0x30d   :  { %v475_v6 = vpop.permute.xlu1 %474  ;;  %v453_v7 = vpop.permute.xlu0 %452 }
 0x30e   :  { %v507_v40 = vsel %vm503_vm8, %v498_v38, %v453_v7  ;;  %v515_v46 = vsel %vm512_vm10, %v506_v45, %v475_v6  ;;  %v1033_v6 = vld [vmem:[#allocation13 + $0x10] sm:$0xff]  ;;  %v1035_v38 = vld [vmem:[#allocation14] sm:$0xff] }
 0x30f   :  { %v523_v50 = vmul.f32 %v515_v46, %v1512_v18  ;;  %v529_v18 = vld [vmem:[#allocation8] sm:$0xff]  ;;  %681 = vmatpush.bf16.msrb.mxu2 %v1033_v6 }
 0x315   :  { %v477_v8 = vpop.permute.xlu0 %476  ;;  %v459_v9 = vpop.permute.xlu1 %458 }
 0x316   :  { %v510_v28 = vsel %vm503_vm8, %v501_v25, %v459_v9 }
 0x31d   :  { %v425_v10 = vpop.permute.xlu0 %424  ;;  %v483_v11 = vpop.permute.xlu1 %482 }
 0x31e   :  { %v519_v31 = vsel %vm512_vm10, %v510_v28, %v483_v11  ;;  %v496_v47 = vsel %vm494_vm9, %v1539_v49, %v425_v10 }
 0x31f   :  { %v527_v37 = vmul.f32 %v519_v31, %v1500_v14  ;;  %v525_v14 = vmul.f32 %v517_v63, %v1506_v16 }
 0x325   :  { %v449_v12 = vpop.permute.xlu0 %448  ;;  %v461_v21 = vpop.permute.xlu1 %460 }
 0x326   :  { %v505_v51 = vsel %vm503_vm8, %v496_v47, %v449_v12 }
 0x32d   :  { %v485_v23 = vpop.permute.xlu1 %484  ;;  %v437_v24 = vpop.permute.xlu0 %436 }
 0x32e   :  { %v502_v26 = vsel %vm494_vm9, %v405_v55, %v437_v24 }
 0x32f   :  { %v511_v29 = vsel %vm503_vm8, %v502_v26, %v461_v21  ;;  %v1032_v21 = vld [vmem:[#allocation13 + $0x8] sm:$0xff] }
 0x330   :  { %v520_v32 = vsel %vm512_vm10, %v511_v29, %v485_v23  ;;  %682 = vmatpush.bf16.msrb.mxu2 %v1032_v21 }
 0x331   :  { %v528_v34 = vmul.f32 %v520_v32, %v1497_v13  ;;  %v516_v13 = vsel %vm512_vm10, %v507_v40, %v477_v8 }
 0x332   :  { %v524_v15 = vmul.f32 %v516_v13, %v1509_v17 }
 0x333   :  { %543 = vmatpush.msra.mxu3 %v528_v34 }
 0x334   :  { %683 = vmatpush.bf16.msrb.mxu2 %v1031_v22 }
 0x335   :  { %v423_v41 = vpop.permute.xlu1 %422  ;;  %v473_v42 = vpop.permute.xlu0 %472  ;;  %544 = vmatpush.msra.mxu3 %v527_v37  ;;  %v1036_v37 = vld [vmem:[#allocation14 + $0x8] sm:$0xff] }
 0x336   :  { %v514_v52 = vsel %vm512_vm10, %v505_v51, %v473_v42  ;;  %v495_v53 = vsel %vm494_vm9, %v1537_v48, %v423_v41 }
 0x337   :  { %545 = vmatpush.msra.mxu3 %v526_v43  ;;  %v522_v55 = vmul.f32 %v514_v52, %v1515_v19  ;;  %v530_v19 = vld [vmem:[#allocation8 + $0x8] sm:$0xff] }
 0x339   :  { %546 = vmatpush.msra.mxu3 %v525_v14 }
 0x33b   :  { %547 = vmatpush.msra.mxu3 %v524_v15 }
 0x33d   :  { %v447_v54 = vpop.permute.xlu1 %446  ;;  %v471_v16 = vpop.permute.xlu0 %470  ;;  %548 = vmatpush.msra.mxu3 %v523_v50 }
 0x33e   :  { %v504_v49 = vsel %vm503_vm8, %v495_v53, %v447_v54 }
 0x33f   :  { %v513_v56 = vsel %vm512_vm10, %v504_v49, %v471_v16  ;;  %549 = vmatpush.msra.mxu3 %v522_v55  ;;  %v1065_v49 = vld [vmem:[%s1645_s8] ss:$0 sm:$0xff]  ;;  %s1363_s8 = smov [#allocation17]  }
 0x340   :  { %v521_v17 = vmul.f32 %v513_v56, %v1518_v20 }
 0x342   :  { %550 = vmatpush.msra.mxu3 %v521_v17 }
 0x343   :  { %960 = vmatmul.msk.f32.vlgmr.msra.gmra.mxu3 %vm193_vm0, %v1521_v27 }
 0x344   :  { %772 = vmatpush.bf16.msrb.mxu3 %v1038_v36 }
 0x34b   :  { %961 = vmatmul.msk.f32.gmra.mxu3 %vm193_vm0, %v1525_v35 }
 0x3c6   :  { %v552_v48 = vpop.f32.mrf.mxu3 }
 0x3c7   :  { %v553_v57 = vadd.f32 %v552_v48, %v529_v18 }
 0x3c9   :  { %v558_v58 = vsel %vm193_vm0, %v553_v57, -inf }
 0x3ca   :  { %559 = vmax.xlane.f32.xlu1 %v558_v58 }
 0x3ce   :  { %v555_v59 = vpop.f32.mrf.mxu3 }
 0x3cf   :  { %v556_v60 = vadd.f32 %v555_v59, %v530_v19  ;;  %v1042_v19 = vld [vmem:[#allocation16 + $0x18] sm:$0xff] }
 0x3d0   :  { %872 = vmatpush.bf16.msra.mxu0 %v1042_v19 }
 0x3d1   :  { %v561_v61 = vsel %vm193_vm0, %v556_v60, -inf }
 0x3d2   :  { %562 = vmax.xlane.f32.xlu0 %v561_v61 }
 0x43d   :  { %v560_v20 = vpop.xlane.xlu1 %559 }
 0x43e   :  { %v564_v62 = vsub.f32 %v553_v57, %v560_v20 }
 0x440   :  { %v566_v63 = vmul.f32 1.442695, %v564_v62 }
 0x442   :  { %1072 = vpow2.f32 %v566_v63  ;;  %v1041_v63 = vld [vmem:[#allocation16 + $0x10] sm:$0xff] }
 0x443   :  { %873 = vmatpush.bf16.msra.mxu0 %v1041_v63 }
 0x445   :  { %v563_v27 = vpop.xlane.xlu0 %562 }
 0x446   :  { %v565_v1 = vsub.f32 %v556_v60, %v563_v27 }
 0x448   :  { %v1073_v3 = vpop.eup %1072  ;;  %v568_v35 = vmul.f32 1.442695, %v565_v1  ;;  %v1040_v1 = vld [vmem:[#allocation16 + $0x8] sm:$0xff] }
 0x449   :  { %962 = vmatmul.msk.f32.vlgmr.msrb.gmra.mxu0 %vm193_vm0, %v1073_v3 }
 0x44a   :  { %1074 = vpow2.f32 %v568_v35  ;;  %874 = vmatpush.bf16.msra.mxu0 %v1040_v1  ;;  %v1039_v35 = vld [vmem:[#allocation16] sm:$0xff] }
 0x44e   :  { %875 = vmatpush.bf16.msra.mxu0 %v1039_v35 }
 0x450   :  { %v1075_v4 = vpop.eup %1074 }
 0x451   :  { %963 = vmatmul.msk.f32.gmra.mxu0 %vm193_vm0, %v1075_v4 }
 0x4c6   :  { %v593_v7 = vpop.f32.mrf.mxu0 }
 0x4c7   :  { %1076 = vrcp.f32 %v593_v7 }
 0x4cd   :  { %v1077_v8 = vpop.eup %1076 }
 0x4ce   :  { %v596_v9 = vpop.f32.mrf.mxu0  ;;  %v601_v10 = vmul.f32 %v1077_v8, %v1073_v3 }
 0x4cf   :  { %1078 = vrcp.f32 %v596_v9 }
 0x4d0   :  { %964 = vmatmul.msk.f32.vlgmr.msrb.gmra.mxu1 %vm193_vm0, %v601_v10 }
 0x4d5   :  { %v1079_v11 = vpop.eup %1078 }
 0x4d6   :  { %v602_v12 = vmul.f32 %v1079_v11, %v1075_v4 }
 0x4d8   :  { %965 = vmatmul.msk.f32.gmra.mxu1 %vm193_vm0, %v602_v12 }
 0x54d   :  { %v634_v23 = vpop.f32.mrf.mxu1 }
 0x555   :  { %v637_v24 = vpop.f32.mrf.mxu1 }
 0x556   :  { %v640_v25 = vpack.c.bf16 %v637_v24, %v634_v23 }
 0x558   :  { %982 = vmatmul.msk.bf16.vlgmr.msrb.gmra.mxu2 %vm193_vm0, %v640_v25 }
 0x5db   :  { %v685_v26 = vpop.f32.mrf.mxu2 }
 0x5dc   :  { %v1605_v28 = vadd.f32 %v685_v26, %v1475_v0  ;;  %v1037_v0 = vld [vmem:[#allocation14 + $0x10] sm:$0xff] }
 0x5dd   :  { %773 = vmatpush.bf16.msrb.mxu3 %v1037_v0 }
 0x5de   :  { %v693_v29 = vmul.f32 %v1605_v28, %v1605_v28 }
 0x5e0   :  { %v695_v30 = vsel %vm193_vm0, %v693_v29, 0.0 }
 0x5e1   :  { %696 = vadd.xlane.f32.xlu1 %v695_v30  ;;  %774 = vmatpush.bf16.msrb.mxu3 %v1036_v37 }
 0x5e3   :  { %v687_v31 = vpop.f32.mrf.mxu2 }
 0x5e4   :  { %v1611_v32 = vadd.f32 %v687_v31, %v1479_v2 }
 0x5e5   :  { %775 = vmatpush.bf16.msrb.mxu3 %v1035_v38 }
 0x5e6   :  { %v694_v33 = vmul.f32 %v1611_v32, %v1611_v32 }
 0x5e8   :  { %v698_v34 = vsel %vm193_vm0, %v694_v33, 0.0 }
 0x5e9   :  { %699 = vadd.xlane.f32.xlu0 %v698_v34 }
 0x654   :  { %v697_v40 = vpop.xlane.xlu1 %696 }
 0x655   :  { %v701_v41 = vmul.f32 %v697_v40, %v1485_v39 }
 0x657   :  { %v703_v42 = vadd.f32 1e-05, %v701_v41 }
 0x659   :  { %1080 = vrsqrt.f32 %v703_v42  ;;  %vm711_vm12 = vweird.f32 %v703_v42 }
 0x65c   :  { %v700_v2 = vpop.xlane.xlu0 %699 }
 0x65d   :  { %v702_v43 = vmul.f32 %v700_v2, %v1485_v39 }
 0x65f   :  { %v1081_v44 = vpop.eup %1080  ;;  %v704_v13 = vadd.f32 1e-05, %v702_v43 }
 0x660   :  { %v706_v45 = vmul.f32 %v1081_v44, %v703_v42  ;;  %vm712_vm11 = vweird.f32 %v1081_v44 }
 0x661   :  { %1082 = vrsqrt.f32 %v704_v13  ;;  %vm713_vm13 = vmor %vm711_vm12, %vm712_vm11  ;;  %vm721_vm15 = vweird.f32 %v704_v13 }
 0x662   :  { %v707_v14 = vmul.f32 %v1081_v44, %v706_v45 }
 0x664   :  { %v708_v46 = vmul.f32 0.5, %v707_v14 }
 0x666   :  { %v709_v47 = vsub.f32 1.5, %v708_v46 }
 0x667   :  { %v1083_v51 = vpop.eup %1082 }
 0x668   :  { %v716_v15 = vmul.f32 %v1083_v51, %v704_v13  ;;  %v710_v52 = vmul.f32 %v1081_v44, %v709_v47  ;;  %vm722_vm14 = vweird.f32 %v1083_v51 }
 0x669   :  { %vm723_vm1 = vmor %vm721_vm15, %vm722_vm14 }
 0x66a   :  { %v717_v50 = vmul.f32 %v1083_v51, %v716_v15  ;;  %v714_v54 = vsel %vm713_vm13, %v1081_v44, %v710_v52 }
 0x66b   :  { %v725_v39 = vmul.f32 %v714_v54, %v1605_v28 }
 0x66c   :  { %v718_v53 = vmul.f32 0.5, %v717_v50 }
 0x66d   :  { %v730_v18 = vmul.f32 %v1065_v49, %v725_v39 }
 0x66e   :  { %v719_v16 = vsub.f32 1.5, %v718_v53 }
 0x670   :  { %v720_v55 = vmul.f32 %v1083_v51, %v719_v16 }
 0x672   :  { %v724_v56 = vsel %vm723_vm1, %v1083_v51, %v720_v55 }
 0x673   :  { %v726_v17 = vmul.f32 %v724_v56, %v1611_v32 }
 0x675   :  { %v731_v48 = vmul.f32 %v1065_v49, %v726_v17 }
 0x677   :  { %v732_v57 = vpack.c.bf16 %v731_v48, %v730_v18 }
 0x679   :  { %999 = vmatmul.msk.bf16.vlgmr.msrb.gmra.mxu3 %vm193_vm0, %v732_v57 }
 0x6fc   :  { %v777_v58 = vpop.f32.mrf.mxu3 }
 0x6fd   :  { %824 = vrot.lane.b32.xlu1 %v777_v58, %s1352_s22  ;;  %v1000_v60 = vmul.f32 -1.442695, %v777_v58 }
 0x6ff   :  { %1084 = vpow2.f32 %v1000_v60 }
 0x704   :  { %v779_v59 = vpop.f32.mrf.mxu3 }
 0x705   :  { %826 = vrot.lane.b32.xlu0 %v779_v59, %s1352_s22  ;;  %v1001_v61 = vmul.f32 -1.442695, %v779_v59  ;;  %v1085_v20 = vpop.eup %1084  ;;  %s890_s22 = sshll.u32 %s1363_s8, 4  ;;  %s891_s22 = int_to_ptr.vmem [resolvable:$true] %s890_s22 }
 0x706   :  { %v788_v27 = vadd.f32 1.0, %v1085_v20 }
 0x707   :  { %1086 = vpow2.f32 %v1001_v61 }
 0x708   :  { %1088 = vrcp.f32 %v788_v27  ;;  %vm795_vm4 = vweird.f32 %v788_v27  ;;  %v801_v23 = vand.u32 2147483648, %v788_v27  ;;  %v799_v25 = vand.u32 2147483647, %v788_v27 }
 0x70a   :  { %v802_v31 = vor.u32 1.1754944e-38, %v801_v23  ;;  %vm800_vm9 = vcmp.eq.f32.partialorder %v799_v25, 8.507059e+37 }
 0x70d   :  { %v1087_v62 = vpop.eup %1086 }
 0x70e   :  { %v789_v3 = vadd.f32 1.0, %v1087_v62  ;;  %v1089_v4 = vpop.eup %1088 }
 0x70f   :  { %v791_v7 = vmul.f32 %v1089_v4, %v788_v27  ;;  %vm796_vm2 = vweird.f32 %v1089_v4 }
 0x710   :  { %1090 = vrcp.f32 %v789_v3  ;;  %v816_v22 = vand.u32 2147483648, %v789_v3  ;;  %vm810_vm5 = vweird.f32 %v789_v3  ;;  %v814_v24 = vand.u32 2147483647, %v789_v3  ;;  %vm797_vm6 = vmor %vm795_vm4, %vm796_vm2 }
 0x711   :  { %v792_v9 = vsub.f32 1.0, %v791_v7 }
 0x712   :  { %v817_v30 = vor.u32 1.1754944e-38, %v816_v22  ;;  %vm815_vm8 = vcmp.eq.f32.partialorder %v814_v24, 8.507059e+37 }
 0x713   :  { %v793_v11 = vmul.f32 %v1089_v4, %v792_v9 }
 0x715   :  { %v794_v21 = vadd.f32 %v1089_v4, %v793_v11 }
 0x716   :  { %v1091_v5 = vpop.eup %1090 }
 0x717   :  { %v806_v6 = vmul.f32 %v1091_v5, %v789_v3  ;;  %vm811_vm3 = vweird.f32 %v1091_v5  ;;  %v798_v29 = vsel %vm797_vm6, %v1089_v4, %v794_v21 }
 0x718   :  { %vm812_vm7 = vmor %vm810_vm5, %vm811_vm3  ;;  %v803_v34 = vsel %vm800_vm9, %v802_v31, %v798_v29 }
 0x719   :  { %v807_v8 = vsub.f32 1.0, %v806_v6  ;;  %v820_v37 = vmul.f32 %v803_v34, %v777_v58 }
 0x71b   :  { %v808_v10 = vmul.f32 %v1091_v5, %v807_v8 }
 0x71d   :  { %v809_v12 = vadd.f32 %v1091_v5, %v808_v10 }
 0x71f   :  { %v813_v26 = vsel %vm812_vm7, %v1091_v5, %v809_v12 }
 0x720   :  { %v818_v33 = vsel %vm815_vm8, %v817_v30, %v813_v26 }
 0x721   :  { %v821_v0 = vmul.f32 %v818_v33, %v779_v59 }
 0x76f   :  { %v825_v36 = vpop.permute.xlu1 %824 }
 0x770   :  { %v830_v40 = vmul.f32 %v825_v36, %v820_v37 }
 0x777   :  { %v827_v38 = vpop.permute.xlu0 %826 }
 0x778   :  { %v831_v41 = vmul.f32 %v827_v38, %v821_v0 }
 0x77a   :  { %v832_v42 = vpack.c.bf16 %v831_v41, %v830_v40 }
 0x77c   :  { %1018 = vmatmul.msk.bf16.vlgmr.msra.gmra.mxu0 %vm193_vm0, %v832_v42 }
 0x7f9   :  { %v877_v2 = vpop.f32.mrf.mxu0 }
 0x7fa   :  { %v882_v43 = vadd.f32 %v877_v2, %v1605_v28 }
 0x7fc   :  { %884 = vst.msk [vmem:[#allocation17] sm:$0xff] %vm193_vm0, %v882_v43 }
 0x801   :  { %v879_v44 = vpop.f32.mrf.mxu0 }
 0x802   :  { %v883_v13 = vadd.f32 %v879_v44, %v1611_v32 }
 0x804   :  { %885 = vst.msk [vmem:[#allocation17 + $0x8] sm:$0xff] %vm193_vm0, %v883_v13 }
 0x805   :  { %898 = dma.vmem_to_hbm [thread:$0]  %s891_s22, 256, %s893_s0, [#allocation4], %s1345_s25, %s1345_s25, %s1346_s26  }
 0x806   :  { %1342 = dma.done.wait [#allocation4], 256  }
 0x807   :  { %1343 = vsyncadd [#allocation4], 4294967040 }
 0x808   :  { %903 = vsyncpa [#allocation3], 1 }
 0x809   :  { %904 = vsyncpa [#allocation6], 1 }
 0x80a   :  { %905 = vsyncpa [#allocation9], 1 }
 0x80b   :  { %906 = vsyncpa [#allocation12], 1 }
 0x80c   :  { %907 = vsyncpa [#allocation15], 1 }
 0x80d   :  { %908 = vsyncpa [#allocation4], 1 }

</bundles_post_ra>
